<compile_context>
chip_gen: v6e
topology: v6e:2x2x1
jax: 0.10.0
libtpu: 0.0.40
codegen_flags: <defaults>
</compile_context>

<pallas_src>
import jax
import jax.numpy as jnp
from jax.experimental import pallas as pl
from jax.experimental.pallas import tpu as pltpu


def mlp_kernel(x_ref, w1_ref, w23_ref, b_ref, o_ref):
    # Cast to bf16 in VMEM right before the MXU dot (HBM carries x only once,
    # in the caller's dtype). All accumulation / bias / relu / softmax in f32.
    x = x_ref[...].astype(jnp.bfloat16)                               # (TB, 784)
    b1 = b_ref[0:1, :]                                                # (1, 128) f32
    b2 = b_ref[1:2, :]                                                # (1, 128) f32
    b3 = b_ref[2:3, :]                                                # (1, 128) f32, pad = -1e30

    # fc1 + relu
    h1 = jnp.dot(x, w1_ref[...], preferred_element_type=jnp.float32) + b1
    h1 = jnp.maximum(h1, 0.0).astype(jnp.bfloat16)                    # (TB, 128)

    # fc2 + relu (w2/b2 pad columns are exactly 0 -> padded lanes of h2 stay 0)
    h2 = jnp.dot(h1, w23_ref[0], preferred_element_type=jnp.float32) + b2
    h2 = jnp.maximum(h2, 0.0).astype(jnp.bfloat16)                    # (TB, 128)

    # fc3 + softmax over 128 padded logits (pad bias = -1e30 -> prob exactly 0)
    logits = jnp.dot(h2, w23_ref[1], preferred_element_type=jnp.float32) + b3
    m = jnp.max(logits, axis=-1, keepdims=True)
    e = jnp.exp(logits - m)
    denom = jnp.sum(e, axis=-1, keepdims=True)
    probs = e / denom                        # exact normalization (kernel is DMA-bound)
    o_ref[...] = probs.astype(o_ref.dtype)   # bf16, 128-lane-dense store


def _round_up(n, m):
    return ((n + m - 1) // m) * m


def network_forward(x, kernel_params, *, tb=2048):
    """x: (B, 1, 28, 28) or (B, 784), any float dtype. Returns softmax probs (B, 10) f32."""
    w1p, w23p, bp = kernel_params            # pre-padded / pre-cast (see pack_params)
    x2d = x.reshape(-1, 28 * 28)             # metadata-only reshape, no HBM copy
    B = x2d.shape[0]

    # ---- batch tile selection ----
    tb = max(8, _round_up(int(tb), 8))
    if B <= 16:
        tbe = B                              # single full-extent block (any B allowed)
    else:
        # cap at ceil(B/2) so there are >= 2 grid steps (feeds both v7x TensorCores)
        tbe = min(tb, _round_up(pl.cdiv(B, 2), 8))
    nb = pl.cdiv(B, tbe)                     # ragged last block: reads padded, writes masked

    xbytes = x2d.size * x2d.dtype.itemsize
    cost = pl.CostEstimate(
        flops=2 * B * (784 * 128 + 128 * 128 + 128 * 128),
        transcendentals=B * 128,
        bytes_accessed=xbytes + w1p.size * 2 + w23p.size * 2 + bp.size * 4 + B * 128 * 2,
    )

    out = pl.pallas_call(
        mlp_kernel,
        out_shape=jax.ShapeDtypeStruct((B, 128), jnp.bfloat16),
        grid=(nb,),
        in_specs=[
            pl.BlockSpec((tbe, 784), lambda i: (i, 0)),        # x tile (native dtype), pipelined
            pl.BlockSpec((784, 128), lambda i: (0, 0)),        # w1  (VMEM-resident, bf16)
            pl.BlockSpec((2, 128, 128), lambda i: (0, 0, 0)),  # w2|w3 stacked (bf16, padded)
            pl.BlockSpec((3, 128), lambda i: (0, 0)),          # b1|b2|b3 stacked (f32, padded)
        ],
        out_specs=pl.BlockSpec((tbe, 128), lambda i: (i, 0)),
        compiler_params=pltpu.CompilerParams(
            dimension_semantics=("parallel",),
            # f32 (2048,784) x tiles double-buffered ~12.8 MiB > v5e's 16 MiB scoped default
            vmem_limit_bytes=48 * 1024 * 1024,
        ),
        cost_estimate=cost,
    )(x2d, w1p, w23p, bp)
    # TODO(synk): downstream consumers could take the (B,128) bf16 padded buffer
    # directly and skip this lane-slice copy.
    return out[:, :10].astype(jnp.float32)


def init_params(key):
    """Deterministic f32 params matching nn.Linear shapes (weights stored transposed)."""
    def linear(k, fan_in, fan_out):
        kw, kb = jax.random.split(k)
        bound = 1.0 / jnp.sqrt(fan_in)
        w = jax.random.uniform(kw, (fan_in, fan_out), jnp.float32, -bound, bound)
        b = jax.random.uniform(kb, (fan_out,), jnp.float32, -bound, bound)
        return w, b

    k1, k2, k3 = jax.random.split(key, 3)
    w1, b1 = linear(k1, 784, 128)
    w2, b2 = linear(k2, 128, 64)
    w3, b3 = linear(k3, 64, 10)
    return (w1, b1, w2, b2, w3, b3)


def pack_params(params_f32):
    """Pad to MXU/lane-friendly shapes, stack small operands, cast weights to bf16.

    Invariants the kernel relies on (do NOT break when repacking):
      * w2/b2 pad columns (64:128) are exactly zero  -> relu keeps h2's pad lanes at 0
      * w3 pad rows (64:128) are exactly zero        -> pad lanes add nothing to logits
      * b3 pad lanes (10:128) are -1e30              -> softmax prob of pad lanes is 0
    """
    w1, b1, w2, b2, w3, b3 = params_f32
    w1p = w1.astype(jnp.bfloat16)                                               # (784, 128)
    w2p = jnp.zeros((128, 128), jnp.float32).at[:, :64].set(w2)
    w3p = jnp.zeros((128, 128), jnp.float32).at[:64, :10].set(w3)
    w23p = jnp.stack([w2p, w3p]).astype(jnp.bfloat16)                           # (2, 128, 128)
    b1p = jnp.asarray(b1, jnp.float32)                                          # (128,)
    b2p = jnp.zeros((128,), jnp.float32).at[:64].set(b2)
    b3p = jnp.full((128,), -1e30, jnp.float32).at[:10].set(b3)
    bp = jnp.stack([b1p, b2p, b3p])                                             # (3, 128)
    return (w1p, w23p, bp)


def reference_forward(x, params_f32):
    """Pure f32 reference matching the PyTorch module."""
    w1, b1, w2, b2, w3, b3 = params_f32
    x2d = x.reshape(-1, 784).astype(jnp.float32)
    h1 = jnp.maximum(x2d @ w1 + b1, 0.0)
    h2 = jnp.maximum(h1 @ w2 + b2, 0.0)
    logits = h2 @ w3 + b3
    return jax.nn.softmax(logits, axis=1)


def reference_forward_bf16(x, params_f32):
    """Reference mirroring the kernel's bf16-matmul / f32-elementwise recipe."""
    w1, b1, w2, b2, w3, b3 = params_f32
    x2d = x.reshape(-1, 784).astype(jnp.bfloat16)
    h1 = jnp.dot(x2d, w1.astype(jnp.bfloat16), preferred_element_type=jnp.float32) + b1
    h1 = jnp.maximum(h1, 0.0).astype(jnp.bfloat16)
    h2 = jnp.dot(h1, w2.astype(jnp.bfloat16), preferred_element_type=jnp.float32) + b2
    h2 = jnp.maximum(h2, 0.0).astype(jnp.bfloat16)
    logits = jnp.dot(h2, w3.astype(jnp.bfloat16), preferred_element_type=jnp.float32) + b3
    return jax.nn.softmax(logits, axis=1)


if __name__ == "__main__":
    key = jax.random.PRNGKey(0)
    kx, kp = jax.random.split(key)
    B = 8
    x = jax.random.normal(kx, (B, 1, 28, 28), jnp.float32)   # FMNIST-like NCHW input
    params_f32 = init_params(kp)
    kernel_params = pack_params(params_f32)

    out = network_forward(x, kernel_params)
    out = jax.block_until_ready(out)
    assert out.shape == (B, 10)

    ref16 = reference_forward_bf16(x, params_f32)
    ref32 = reference_forward(x, params_f32)
    # Kernel matches the bf16-compute reference up to the bf16 output quantization
    # (~4e-3 on probs near 1); the f32 reference within bf16-matmul tolerance.
    assert jnp.allclose(out, ref16, atol=1e-2), float(jnp.max(jnp.abs(out - ref16)))
    assert jnp.allclose(out, ref32, atol=3e-2), float(jnp.max(jnp.abs(out - ref32)))
    # Rows sum to 1 up to the bf16 output rounding.
    assert jnp.allclose(jnp.sum(out, axis=1), 1.0, atol=2e-2)

    print("KERNEL_OK")
</pallas_src>

<mosaic_0001>
module attributes {stable_mosaic.version = 11 : i64} {
  func.func @mlp_kernel(%arg0: i32, %arg1: memref<8x784xf32, #tpu.memory_space<vmem>>, %arg2: memref<784x128xbf16, #tpu.memory_space<vmem>>, %arg3: memref<2x128x128xbf16, #tpu.memory_space<vmem>>, %arg4: memref<3x128xf32, #tpu.memory_space<vmem>>, %arg5: memref<8x128xbf16, #tpu.memory_space<vmem>>) attributes {dimension_semantics = [#tpu.dimension_semantics<parallel>], iteration_bounds = array<i64: 1>, scalar_prefetch = 0 : i64, scratch_operands = 0 : i64, tpu.core_type = #tpu.core_type<tc>, window_params = [{transform_indices = @transform_0, window_bounds = array<i64: 8, 784>}, {pipeline_mode = #tpu.pipeline_mode<synchronous>, transform_indices = @transform_1, window_bounds = array<i64: 784, 128>}, {pipeline_mode = #tpu.pipeline_mode<synchronous>, transform_indices = @transform_2, window_bounds = array<i64: 2, 128, 128>}, {pipeline_mode = #tpu.pipeline_mode<synchronous>, transform_indices = @transform_3, window_bounds = array<i64: 3, 128>}, {transform_indices = @transform_4, window_bounds = array<i64: 8, 128>}]} {
    %c0 = arith.constant 0 : index
    %c0_0 = arith.constant 0 : index
    %0 = vector.load %arg1[%c0, %c0_0] : memref<8x784xf32, #tpu.memory_space<vmem>>, vector<8x784xf32>
    %1 = arith.truncf %0 : vector<8x784xf32> to vector<8x784xbf16>
    %c0_1 = arith.constant 0 : index
    %c0_2 = arith.constant 0 : index
    %2 = vector.load %arg4[%c0_1, %c0_2] : memref<3x128xf32, #tpu.memory_space<vmem>>, vector<1x128xf32>
    %c1 = arith.constant 1 : index
    %c0_3 = arith.constant 0 : index
    %3 = vector.load %arg4[%c1, %c0_3] : memref<3x128xf32, #tpu.memory_space<vmem>>, vector<1x128xf32>
    %c2 = arith.constant 2 : index
    %c0_4 = arith.constant 0 : index
    %4 = vector.load %arg4[%c2, %c0_4] : memref<3x128xf32, #tpu.memory_space<vmem>>, vector<1x128xf32>
    %c0_5 = arith.constant 0 : index
    %c0_6 = arith.constant 0 : index
    %5 = vector.load %arg2[%c0_5, %c0_6] : memref<784x128xbf16, #tpu.memory_space<vmem>>, vector<784x128xbf16>
    %cst = arith.constant dense<0.000000e+00> : vector<8x128xf32>
    %6 = tpu.matmul %1, %5, %cst {dimension_numbers = #tpu.dot_dimension_numbers<[1], [0], [0], [1], [0, 0, 1, 1], [], []>} : vector<8x784xbf16>, vector<784x128xbf16>, vector<8x128xf32> -> vector<8x128xf32>
    %7 = vector.broadcast %2 : vector<1x128xf32> to vector<8x128xf32>
    %8 = arith.addf %6, %7 : vector<8x128xf32>
    %cst_7 = arith.constant 0.000000e+00 : f32
    %9 = vector.broadcast %cst_7 : f32 to vector<8x128xf32>
    %10 = arith.maximumf %8, %9 : vector<8x128xf32>
    %11 = arith.truncf %10 : vector<8x128xf32> to vector<8x128xbf16>
    %c0_8 = arith.constant 0 : index
    %c0_9 = arith.constant 0 : index
    %c0_10 = arith.constant 0 : index
    %12 = vector.load %arg3[%c0_8, %c0_9, %c0_10] : memref<2x128x128xbf16, #tpu.memory_space<vmem>>, vector<1x128x128xbf16>
    %13 = vector.shape_cast %12 : vector<1x128x128xbf16> to vector<128x128xbf16>
    %cst_11 = arith.constant dense<0.000000e+00> : vector<8x128xf32>
    %14 = tpu.matmul %11, %13, %cst_11 {dimension_numbers = #tpu.dot_dimension_numbers<[1], [0], [0], [1], [0, 0, 1, 1], [], []>} : vector<8x128xbf16>, vector<128x128xbf16>, vector<8x128xf32> -> vector<8x128xf32>
    %15 = vector.broadcast %3 : vector<1x128xf32> to vector<8x128xf32>
    %16 = arith.addf %14, %15 : vector<8x128xf32>
    %cst_12 = arith.constant 0.000000e+00 : f32
    %17 = vector.broadcast %cst_12 : f32 to vector<8x128xf32>
    %18 = arith.maximumf %16, %17 : vector<8x128xf32>
    %19 = arith.truncf %18 : vector<8x128xf32> to vector<8x128xbf16>
    %c1_13 = arith.constant 1 : index
    %c0_14 = arith.constant 0 : index
    %c0_15 = arith.constant 0 : index
    %20 = vector.load %arg3[%c1_13, %c0_14, %c0_15] : memref<2x128x128xbf16, #tpu.memory_space<vmem>>, vector<1x128x128xbf16>
    %21 = vector.shape_cast %20 : vector<1x128x128xbf16> to vector<128x128xbf16>
    %cst_16 = arith.constant dense<0.000000e+00> : vector<8x128xf32>
    %22 = tpu.matmul %19, %21, %cst_16 {dimension_numbers = #tpu.dot_dimension_numbers<[1], [0], [0], [1], [0, 0, 1, 1], [], []>} : vector<8x128xbf16>, vector<128x128xbf16>, vector<8x128xf32> -> vector<8x128xf32>
    %23 = vector.broadcast %4 : vector<1x128xf32> to vector<8x128xf32>
    %24 = arith.addf %22, %23 : vector<8x128xf32>
    %cst_17 = arith.constant dense<0xFF800000> : vector<8xf32>
    %25 = vector.multi_reduction <maximumf>, %24, %cst_17 [1] : vector<8x128xf32> to vector<8xf32>
    %26 = vector.shape_cast %25 : vector<8xf32> to vector<8x1xf32>
    %27 = vector.broadcast %26 : vector<8x1xf32> to vector<8x128xf32>
    %28 = arith.subf %24, %27 : vector<8x128xf32>
    %29 = math.exp %28 : vector<8x128xf32>
    %cst_18 = arith.constant dense<0.000000e+00> : vector<8xf32>
    %30 = vector.multi_reduction <add>, %29, %cst_18 [1] : vector<8x128xf32> to vector<8xf32>
    %31 = vector.shape_cast %30 : vector<8xf32> to vector<8x1xf32>
    %32 = vector.broadcast %31 : vector<8x1xf32> to vector<8x128xf32>
    %33 = arith.divf %29, %32 : vector<8x128xf32>
    %34 = arith.truncf %33 : vector<8x128xf32> to vector<8x128xbf16>
    %c0_19 = arith.constant 0 : index
    %c0_20 = arith.constant 0 : index
    %35 = vector.load %arg5[%c0_19, %c0_20] : memref<8x128xbf16, #tpu.memory_space<vmem>>, vector<8x128xbf16>
    tpu.vector_store %arg5[%c0_19, %c0_20], %34 {strides = array<i32>} : memref<8x128xbf16, #tpu.memory_space<vmem>>, vector<8x128xbf16>,
    return
  }
  func.func @transform_0(%arg0: i32) -> (i32, i32) {
    %c0_i32 = arith.constant 0 : i32
    %c0_i32_0 = arith.constant 0 : i32
    return %arg0, %c0_i32 : i32, i32
  }
  func.func @transform_1(%arg0: i32) -> (i32, i32) {
    %c0_i32 = arith.constant 0 : i32
    %c0_i32_0 = arith.constant 0 : i32
    %c0_i32_1 = arith.constant 0 : i32
    return %c0_i32, %c0_i32_0 : i32, i32
  }
  func.func @transform_2(%arg0: i32) -> (i32, i32, i32) {
    %c0_i32 = arith.constant 0 : i32
    %c0_i32_0 = arith.constant 0 : i32
    %c0_i32_1 = arith.constant 0 : i32
    %c0_i32_2 = arith.constant 0 : i32
    return %c0_i32, %c0_i32_0, %c0_i32_1 : i32, i32, i32
  }
  func.func @transform_3(%arg0: i32) -> (i32, i32) {
    %c0_i32 = arith.constant 0 : i32
    %c0_i32_0 = arith.constant 0 : i32
    %c0_i32_1 = arith.constant 0 : i32
    return %c0_i32, %c0_i32_0 : i32, i32
  }
  func.func @transform_4(%arg0: i32) -> (i32, i32) {
    %c0_i32 = arith.constant 0 : i32
    %c0_i32_0 = arith.constant 0 : i32
    return %arg0, %c0_i32 : i32, i32
  }
}

</mosaic_0001>

<bundles_post_ra>
// kernel: tpu_custom_call.1
= control target key start
LH: loop header
LB: loop body
LE: loop exit
PB: predicated region body
PF: predicated region fallthrough
CT: control target
= control target key end

     0   :  { %9 = vsyncpa [#allocation3], 0  ;;  %s1324_s0 = inlined_call_operand.hbm [shape: f32[8,784], index: 0, kind: input, shape index: {}]   ;;  %s1325_s1 = inlined_call_operand.hbm [shape: bf16[784,128], index: 1, kind: input, shape index: {}]   ;;  %s1326_s2 = inlined_call_operand.hbm [shape: bf16[2,128,128], index: 2, kind: input, shape index: {}]   ;;  %s1327_s3 = inlined_call_operand.vmem [shape: f32[3,128], index: 3, kind: input, shape index: {}]   ;;  %s1328_s4 = inlined_call_operand.hbm [shape: bf16[8,128], index: 4, kind: output, shape index: {}]  }
   0x1   :  { %10 = vsyncpa [#allocation6], 0 }
   0x2   :  { %11 = vsyncpa [#allocation4], 0  ;;  %s1247_s15 = smov [#allocation5]  }
   0x3   :  { %s27_s16 = sshll.u32 %s1247_s15, 4  ;;  %s28_s16 = int_to_ptr.vmem [resolvable:$true] %s27_s16 }
   0x4   :  { %s1169_s17 = scalar_lea.vmem %s28_s16, 6272  ;;  %p1174_p1 = scmp.lt.s32.totalorder %s28_s16, %s28_s16 }
   0x5   :  { %p1170_p0 = scmp.ne.s32.totalorder %s28_s16, %s1169_s17  ;;  %p1175_p2 = scmp.lt.s32.totalorder %s1169_s17, %s1169_s17 }
   0x7   :  { %p1176_p3 = por %p1175_p2, %p1174_p1 }
   0x9   :  { %p1177_p4 = pnand %p1176_p3, %p1170_p0 }
   0xb   :  { %1180 = shalt.err (!%p1177_p4)
}
   0xc   :  { %s1248_s18 = smov 64   ;;  %s1249_s19 = smov 4  }
   0xd   :  { %33 = dma.hbm_to_vmem [thread:$0]  %s1325_s1, 6272, %s28_s16, [#allocation6], %s1248_s18, %s1248_s18, %s1249_s19  }
   0xe   :  { %s1250_s22 = smov [#allocation2]   ;;  %s1251_s24 = smov [#allocation7]  }
   0xf   :  { %s18_s23 = sshll.u32 %s1250_s22, 4  ;;  %s39_s25 = sshll.u32 %s1251_s24, 4  ;;  %s19_s23 = int_to_ptr.vmem [resolvable:$true] %s18_s23  ;;  %s40_s25 = int_to_ptr.vmem [resolvable:$true] %s39_s25 }
  0x10   :  { %s1189_s26 = scalar_lea.vmem %s19_s23, 896  ;;  %p1194_p6 = scmp.lt.s32.totalorder %s19_s23, %s19_s23 }
  0x11   :  { %p1190_p5 = scmp.ne.s32.totalorder %s19_s23, %s1189_s26  ;;  %p1195_p7 = scmp.lt.s32.totalorder %s1189_s26, %s1189_s26 }
  0x13   :  { %p1196_p8 = por %p1195_p7, %p1194_p6 }
  0x15   :  { %p1197_p9 = pnand %p1196_p8, %p1190_p5 }
  0x17   :  { %1200 = shalt.err (!%p1197_p9)
}
  0x18   :  { %21 = dma.hbm_to_vmem [thread:$0]  %s1324_s0, 896, %s19_s23, [#allocation3]  }
  0x19   :  { %s1209_s29 = scalar_lea.vmem %s40_s25, 2048  ;;  %p1214_p11 = scmp.lt.s32.totalorder %s40_s25, %s40_s25 }
  0x1a   :  { %p1210_p10 = scmp.ne.s32.totalorder %s40_s25, %s1209_s29  ;;  %p1215_p12 = scmp.lt.s32.totalorder %s1209_s29, %s1209_s29 }
  0x1c   :  { %p1216_p13 = por %p1215_p12, %p1214_p11 }
  0x1e   :  { %p1217_p0 = pnand %p1216_p13, %p1210_p10 }
  0x20   :  { %1220 = shalt.err (!%p1217_p0)
}
  0x21   :  { %45 = dma.hbm_to_vmem [thread:$0]  %s1326_s2, 2048, %s40_s25, [#allocation6], %s1248_s18, %s1248_s18, %s1249_s19  }
  0x22   :  { %1241 = dma.done.wait [#allocation3], 896  }
  0x23   :  { %1242 = vsyncadd [#allocation3], 4294966400 }
  0x24   :  { %1243 = dma.done.wait [#allocation6], 8320  }
  0x25   :  { %1244 = vsyncadd [#allocation6], 4294958976  ;;  %v1092_v0 = vld [vmem:[#allocation5 + $0x78] sm:$0xff]   ;;  %v1096_v4 = vld [vmem:[#allocation5 + $0x70] sm:$0xff]   ;;  %v1252_v44 = vmov 0.0   ;;  %vm1253_vm0 = vmmov 0  }
  0x26   :  { %v1093_v1 = vld [vmem:[#allocation5 + $0x38] sm:$0xff]   ;;  %952 = vmatprep.subr.bf16.mxu0 %v1092_v0  ;;  %v1097_v5 = vld [vmem:[#allocation5 + $0x30] sm:$0xff]   ;;  %v1100_v8 = vld [vmem:[#allocation5 + $0x68] sm:$0xff]   ;;  %vm471_vm1 = vcmask 130048   ;;  %s1254_s9 = smov [#allocation8]  }
  0x27   :  { %v1094_v2 = vld [vmem:[#allocation5 + $0xf8] sm:$0xff]   ;;  %953 = vmatpush3.bf16.msra.mxu0 %v1093_v1  ;;  %v1098_v6 = vld [vmem:[#allocation5 + $0xf0] sm:$0xff]   ;;  %v1101_v9 = vld [vmem:[#allocation5 + $0x28] sm:$0xff]   ;;  %s873_s10 = sshll.u32 %s1254_s9, 4  ;;  %s874_s10 = int_to_ptr.vmem [resolvable:$true] %s873_s10 }
  0x28   :  { %v1095_v3 = vld [vmem:[#allocation5 + $0xb8] sm:$0xff]   ;;  %974 = vmatprep.subr.bf16.mxu1 %v1094_v2  ;;  %954 = vmatprep.subr.bf16.mxu0 %v1096_v4  ;;  %v1099_v7 = vld [vmem:[#allocation5 + $0xb0] sm:$0xff]   ;;  %v1102_v10 = vld [vmem:[#allocation5 + $0xe8] sm:$0xff]   ;;  %p1226_p2 = scmp.lt.s32.totalorder %s874_s10, %s874_s10 }
  0x29   :  { %975 = vmatpush3.bf16.msra.mxu1 %v1095_v3  ;;  %v1103_v11 = vld [vmem:[#allocation5 + $0xa8] sm:$0xff]   ;;  %v1104_v12 = vld [vmem:[#allocation5 + $0x60] sm:$0xff]   ;;  %v1108_v16 = vld [vmem:[#allocation5 + $0x58] sm:$0xff]  }
  0x2a   :  { %976 = vmatprep.subr.bf16.mxu1 %v1098_v6  ;;  %v1105_v13 = vld [vmem:[#allocation5 + $0x20] sm:$0xff]   ;;  %v1109_v17 = vld [vmem:[#allocation5 + $0x18] sm:$0xff]   ;;  %v1112_v20 = vld [vmem:[#allocation5 + $0x50] sm:$0xff]  }
  0x2b   :  { %955 = vmatpush3.bf16.msra.mxu0 %v1097_v5  ;;  %v1106_v14 = vld [vmem:[#allocation5 + $0xe0] sm:$0xff]   ;;  %v1110_v18 = vld [vmem:[#allocation5 + $0xd8] sm:$0xff]   ;;  %v1113_v21 = vld [vmem:[#allocation5 + $0x10] sm:$0xff]  }
  0x2c   :  { %956 = vmatprep.subr.bf16.mxu0 %v1100_v8  ;;  %v1107_v15 = vld [vmem:[#allocation5 + $0xa0] sm:$0xff]   ;;  %v1111_v19 = vld [vmem:[#allocation5 + $0x98] sm:$0xff]   ;;  %v1114_v22 = vld [vmem:[#allocation5 + $0xd0] sm:$0xff]  }
  0x2d   :  { %977 = vmatpush3.bf16.msra.mxu1 %v1099_v7  ;;  %v1115_v23 = vld [vmem:[#allocation5 + $0x90] sm:$0xff]   ;;  %v1116_v24 = vld [vmem:[#allocation5 + $0x48] sm:$0xff]   ;;  %v1120_v28 = vld [vmem:[#allocation5 + $0x40] sm:$0xff]  }
  0x2e   :  { %978 = vmatprep.subr.bf16.mxu1 %v1102_v10  ;;  %v1117_v25 = vld [vmem:[#allocation5 + $0x8] sm:$0xff]   ;;  %v1121_v29 = vld [vmem:[#allocation5] sm:$0xff]   ;;  %v59_v31 = vld [vmem:[#allocation2 + $0x8] sm:$0xff] }
  0x2f   :  { %957 = vmatpush3.bf16.msra.mxu0 %v1101_v9  ;;  %v1118_v26 = vld [vmem:[#allocation5 + $0xc8] sm:$0xff]   ;;  %v1122_v30 = vld [vmem:[#allocation5 + $0xc0] sm:$0xff]   ;;  %v66_v32 = vpack.c.bf16 %v59_v31, %v59_v31  ;;  %v1124_v36 = vld [vmem:[#allocation5 + $0x178] sm:$0xff]  }
  0x30   :  { %958 = vmatprep.subr.bf16.mxu0 %v1104_v12  ;;  %v1119_v27 = vld [vmem:[#allocation5 + $0x88] sm:$0xff]   ;;  %v1123_v33 = vld [vmem:[#allocation5 + $0x80] sm:$0xff]   ;;  %v1125_v39 = vld [vmem:[#allocation5 + $0x138] sm:$0xff]  }
  0x31   :  { %979 = vmatpush3.bf16.msra.mxu1 %v1103_v11  ;;  %v58_v34 = vld [vmem:[#allocation2] sm:$0xff]  ;;  %v61_v37 = vld [vmem:[#allocation2 + $0x18] sm:$0xff]  ;;  %507 = vmatprep.mubr.bf16.mxu0 %v66_v32  ;;  %v60_v40 = vld [vmem:[#allocation2 + $0x10] sm:$0xff] }
  0x32   :  { %980 = vmatprep.subr.bf16.mxu1 %v1106_v14  ;;  %v65_v35 = vpack.c.bf16 %v58_v34, %v58_v34  ;;  %v68_v38 = vpack.c.bf16 %v61_v37, %v61_v37  ;;  %v67_v41 = vpack.c.bf16 %v60_v40, %v60_v40  ;;  %v1126_v42 = vld [vmem:[#allocation5 + $0x170] sm:$0xff]   ;;  %v1128_v45 = vld [vmem:[#allocation5 + $0x168] sm:$0xff]   ;;  %v1130_v47 = vld [vmem:[#allocation5 + $0x160] sm:$0xff]  }
  0x33   :  { %959 = vmatpush3.bf16.msra.mxu0 %v1105_v13  ;;  %v1127_v43 = vld [vmem:[#allocation5 + $0x130] sm:$0xff]   ;;  %v1129_v46 = vld [vmem:[#allocation5 + $0x128] sm:$0xff]   ;;  %v1131_v48 = vld [vmem:[#allocation5 + $0x120] sm:$0xff]  }
  0x34   :  { %960 = vmatprep.subr.bf16.mxu0 %v1108_v16  ;;  %547 = vmatprep.mubr.bf16.mxu1 %v68_v38  ;;  %v1132_v49 = vld [vmem:[#allocation5 + $0x158] sm:$0xff]   ;;  %v1134_v51 = vld [vmem:[#allocation5 + $0x150] sm:$0xff]   ;;  %v1140_v53 = vld [vmem:[#allocation5 + $0x180] sm:$0xff]  }
  0x35   :  { %981 = vmatpush3.bf16.msra.mxu1 %v1107_v15  ;;  %v1133_v50 = vld [vmem:[#allocation5 + $0x118] sm:$0xff]   ;;  %v1135_v52 = vld [vmem:[#allocation5 + $0x110] sm:$0xff]   ;;  %v1136_v55 = vld [vmem:[#allocation5 + $0x148] sm:$0xff]  }
  0x36   :  { %982 = vmatprep.subr.bf16.mxu1 %v1110_v18  ;;  %v63_v54 = vld [vmem:[#allocation2 + $0x28] sm:$0xff]  ;;  %v64_v57 = vld [vmem:[#allocation2 + $0x30] sm:$0xff]  ;;  %v1137_v59 = vld [vmem:[#allocation5 + $0x108] sm:$0xff]  }
  0x37   :  { %961 = vmatpush3.bf16.msra.mxu0 %v1109_v17  ;;  %v70_v56 = vpack.c.bf16 %v63_v54, %v63_v54  ;;  %v71_v58 = vpack.c.bf16 %v64_v57, %v64_v57  ;;  %v1138_v60 = vld [vmem:[#allocation5 + $0x140] sm:$0xff]   ;;  %v62_v62 = vld [vmem:[#allocation2 + $0x20] sm:$0xff]  ;;  %v1142_v1 = vld [vmem:[#allocation7 + $0x30] sm:$0xff]  }
  0x38   :  { %962 = vmatprep.subr.bf16.mxu0 %v1112_v20  ;;  %v1139_v61 = vld [vmem:[#allocation5 + $0x100] sm:$0xff]   ;;  %v69_v63 = vpack.c.bf16 %v62_v62, %v62_v62  ;;  %v1143_v2 = vld [vmem:[#allocation7 + $0x28] sm:$0xff]   ;;  %v1144_v3 = vld [vmem:[#allocation7 + $0x20] sm:$0xff]  }
  0x39   :  { %983 = vmatpush3.bf16.msra.mxu1 %v1111_v19  ;;  %v1141_v0 = vld [vmem:[#allocation7 + $0x38] sm:$0xff]   ;;  %v1146_v5 = vld [vmem:[#allocation7 + $0x10] sm:$0xff]   ;;  %v1147_v6 = vld [vmem:[#allocation7 + $0x8] sm:$0xff]  }
  0x3a   :  { %984 = vmatprep.subr.bf16.mxu1 %v1114_v22  ;;  %v1145_v4 = vld [vmem:[#allocation7 + $0x18] sm:$0xff]   ;;  %v1148_v7 = vld [vmem:[#allocation7] sm:$0xff]   ;;  %v1150_v9 = vld [vmem:[#allocation7 + $0x70] sm:$0xff]  }
  0x3b   :  { %963 = vmatpush3.bf16.msra.mxu0 %v1113_v21  ;;  %v1149_v8 = vld [vmem:[#allocation7 + $0x78] sm:$0xff]   ;;  %v1151_v10 = vld [vmem:[#allocation7 + $0x68] sm:$0xff]   ;;  %v1152_v11 = vld [vmem:[#allocation7 + $0x60] sm:$0xff]  }
  0x3c   :  { %964 = vmatprep.subr.bf16.mxu0 %v1116_v24  ;;  %v1153_v12 = vld [vmem:[#allocation7 + $0x58] sm:$0xff]   ;;  %v1154_v13 = vld [vmem:[#allocation7 + $0x50] sm:$0xff]   ;;  %v1155_v40 = vld [vmem:[#allocation7 + $0x48] sm:$0xff]  }
  0x3d   :  { %985 = vmatpush3.bf16.msra.mxu1 %v1115_v23 }
  0x3e   :  { %986 = vmatprep.subr.bf16.mxu1 %v1118_v26 }
  0x3f   :  { %965 = vmatpush3.bf16.msra.mxu0 %v1117_v25 }
  0x40   :  { %966 = vmatprep.subr.bf16.mxu0 %v1120_v28 }
  0x41   :  { %987 = vmatpush3.bf16.msra.mxu1 %v1119_v27  ;;  %v883_v27 = vld [vmem:[%s1327_s3] ss:$0 sm:$0xff] }
  0x42   :  { %988 = vmatprep.subr.bf16.mxu1 %v1122_v30 }
  0x43   :  { %967 = vmatpush3.bf16.msra.mxu0 %v1121_v29 }
  0x44   :  { %996 = vmatprep.subr.bf16.mxu0 %v1124_v36 }
  0x45   :  { %989 = vmatpush3.bf16.msra.mxu1 %v1123_v33 }
  0x46   :  { %508 = vmatmul.mubr.bf16.vlgmr.msra.gmra.mxu0 %v65_v35  ;;  %1038 = vmatprep.subr.bf16.mxu1 %v1252_v44 }
  0x47   :  { %997 = vmatpush3.bf16.msra.mxu0 %v1125_v39  ;;  %587 = vmatprep.mubr.bf16.mxu0 %v70_v56 }
  0x48   :  { %548 = vmatmul.mubr.bf16.vlgmr.msra.gmra.mxu1 %v67_v41  ;;  %998 = vmatprep.subr.bf16.mxu0 %v1126_v42  ;;  %v1156_v41 = vld [vmem:[#allocation7 + $0x40] sm:$0xff]  }
  0x49   :  { %1040 = vmatprep.mubr.msk.bf16.mxu1 %vm1253_vm0, %v1252_v44  ;;  %1039 = vmatpush3.bf16.msra.mxu1 %v1140_v53  ;;  %v934_v42 = vld [vmem:[%s1327_s3 + $0x1] ss:$0 sm:$0xff] }
  0x4a   :  { %1044 = vmatprep.subr.bf16.mxu1 %v1252_v44 }
  0x4b   :  { %999 = vmatpush3.bf16.msra.mxu0 %v1127_v43 }
  0x4c   :  { %1000 = vmatprep.subr.bf16.mxu0 %v1128_v45 }
  0x4f   :  { %1001 = vmatpush3.bf16.msra.mxu0 %v1129_v46 }
  0x50   :  { %1002 = vmatprep.subr.bf16.mxu0 %v1130_v47  ;;  %1041 = vmatmul.mubr.msk.bf16.vlgmr.msra.gmra.mxu1 %vm471_vm1, %v71_v58 }
  0x51   :  { %1060 = vmatprep.mubr.msk.bf16.mxu1 %vm1253_vm0, %v1252_v44  ;;  %1045 = vmatpush3.bf16.msra.mxu1 %v1141_v0 }
  0x52   :  { %1046 = vmatprep.subr.bf16.mxu1 %v1252_v44 }
  0x53   :  { %1003 = vmatpush3.bf16.msra.mxu0 %v1131_v48 }
  0x54   :  { %1004 = vmatprep.subr.bf16.mxu0 %v1132_v49 }
  0x55   :  { %1047 = vmatpush3.bf16.msra.mxu1 %v1142_v1 }
  0x56   :  { %1048 = vmatprep.subr.bf16.mxu1 %v1252_v44 }
  0x57   :  { %1005 = vmatpush3.bf16.msra.mxu0 %v1133_v50 }
  0x58   :  { %1006 = vmatprep.subr.bf16.mxu0 %v1134_v51  ;;  %v943_v51 = vld [vmem:[%s1327_s3 + $0x2] ss:$0 sm:$0xff]  ;;  %s1221_s3 = scalar_lea.vmem %s874_s10, 64 }
  0x59   :  { %1049 = vmatpush3.bf16.msra.mxu1 %v1143_v2  ;;  %p1222_p1 = scmp.ne.s32.totalorder %s874_s10, %s1221_s3  ;;  %p1227_p3 = scmp.lt.s32.totalorder %s1221_s3, %s1221_s3 }
  0x5a   :  { %1050 = vmatprep.subr.bf16.mxu1 %v1252_v44 }
  0x5b   :  { %1007 = vmatpush3.bf16.msra.mxu0 %v1135_v52  ;;  %p1228_p4 = por %p1227_p3, %p1226_p2 }
  0x5c   :  { %1008 = vmatprep.subr.bf16.mxu0 %v1136_v55 }
  0x5d   :  { %1051 = vmatpush3.bf16.msra.mxu1 %v1144_v3  ;;  %p1229_p5 = pnand %p1228_p4, %p1222_p1 }
  0x5e   :  { %1052 = vmatprep.subr.bf16.mxu1 %v1252_v44 }
  0x5f   :  { %1009 = vmatpush3.bf16.msra.mxu0 %v1137_v59 }
  0x60   :  { %1010 = vmatprep.subr.bf16.mxu0 %v1138_v60 }
  0x61   :  { %1053 = vmatpush3.bf16.msra.mxu1 %v1145_v4 }
  0x62   :  { %1054 = vmatprep.subr.bf16.mxu1 %v1252_v44 }
  0x63   :  { %1011 = vmatpush3.bf16.msra.mxu0 %v1139_v61 }
  0x64   :  { %1064 = vmatprep.subr.bf16.mxu0 %v1252_v44 }
  0x65   :  { %1055 = vmatpush3.bf16.msra.mxu1 %v1146_v5 }
  0x66   :  { %588 = vmatmul.mubr.bf16.vlgmr.msra.gmra.mxu0 %v69_v63  ;;  %1056 = vmatprep.subr.bf16.mxu1 %v1252_v44 }
  0x67   :  { %1080 = vmatprep.mubr.msk.bf16.mxu0 %vm1253_vm0, %v1252_v44  ;;  %1065 = vmatpush3.bf16.msra.mxu0 %v1149_v8 }
  0x68   :  { %1066 = vmatprep.subr.bf16.mxu0 %v1252_v44 }
  0x69   :  { %1057 = vmatpush3.bf16.msra.mxu1 %v1147_v6 }
  0x6a   :  { %1058 = vmatprep.subr.bf16.mxu1 %v1252_v44 }
  0x6b   :  { %1067 = vmatpush3.bf16.msra.mxu0 %v1150_v9 }
  0x6c   :  { %1068 = vmatprep.subr.bf16.mxu0 %v1252_v44 }
  0x6d   :  { %1059 = vmatpush3.bf16.msra.mxu1 %v1148_v7 }
  0x6f   :  { %1069 = vmatpush3.bf16.msra.mxu0 %v1151_v10 }
  0x70   :  { %1070 = vmatprep.subr.bf16.mxu0 %v1252_v44 }
  0x73   :  { %1071 = vmatpush3.bf16.msra.mxu0 %v1152_v11 }
  0x74   :  { %1072 = vmatprep.subr.bf16.mxu0 %v1252_v44 }
  0x77   :  { %1073 = vmatpush3.bf16.msra.mxu0 %v1153_v12 }
  0x78   :  { %1074 = vmatprep.subr.bf16.mxu0 %v1252_v44 }
  0x7b   :  { %1075 = vmatpush3.bf16.msra.mxu0 %v1154_v13 }
  0x7c   :  { %1076 = vmatprep.subr.bf16.mxu0 %v1252_v44 }
  0x7f   :  { %1077 = vmatpush3.bf16.msra.mxu0 %v1155_v40 }
  0x80   :  { %1078 = vmatprep.subr.bf16.mxu0 %v1252_v44 }
  0x83   :  { %1079 = vmatpush3.bf16.msra.mxu0 %v1156_v41 }
 0x106   :  { %v968_v14 = vpop.f32.mrf.mxu0 }
 0x108   :  { %v969_v15 = vpop.f32.mrf.mxu0  ;;  %v990_v16 = vpop.f32.mrf.mxu1 }
 0x109   :  { %v970_v26 = vadd.f32 %v969_v15, %v968_v14 }
 0x10a   :  { %v971_v17 = vpop.f32.mrf.mxu0  ;;  %v991_v18 = vpop.f32.mrf.mxu1 }
 0x10b   :  { %v510_v28 = vadd.f32 %v970_v26, %v883_v27  ;;  %v992_v29 = vadd.f32 %v991_v18, %v990_v16 }
 0x10c   :  { %v972_v19 = vpop.f32.mrf.mxu0  ;;  %v993_v20 = vpop.f32.mrf.mxu1 }
 0x10d   :  { %v550_v32 = vadd.f32 %v992_v29, %v510_v28 }
 0x10e   :  { %v994_v21 = vpop.f32.mrf.mxu1 }
 0x110   :  { %v629_v22 = vpop.f32.mrf.mxu1 }
 0x112   :  { %v1042_v23 = vpop.f32.mrf.mxu1 }
 0x114   :  { %v632_v24 = vpop.f32.mrf.mxu1 }
 0x116   :  { %v1043_v25 = vpop.f32.mrf.mxu1 }
 0x126   :  { %v1012_v30 = vpop.f32.mrf.mxu0 }
 0x128   :  { %v1013_v31 = vpop.f32.mrf.mxu0 }
 0x129   :  { %v1014_v33 = vadd.f32 %v1013_v31, %v1012_v30 }
 0x12a   :  { %v1015_v34 = vpop.f32.mrf.mxu0 }
 0x12b   :  { %v590_v35 = vadd.f32 %v1014_v33, %v550_v32 }
 0x12c   :  { %v1016_v36 = vpop.f32.mrf.mxu0 }
 0x12d   :  { %v630_v37 = vadd.f32 %v629_v22, %v590_v35 }
 0x12f   :  { %v635_v38 = vmax.f32 %v630_v37, 0.0 }
 0x131   :  { %v636_v39 = vpack.c.bf16 %v635_v38, %v635_v38 }
 0x133   :  { %1061 = vmatmul.mubr.bf16.vlgmr.msra.gmra.mxu1 %v636_v39 }
 0x1f3   :  { %v739_v43 = vpop.f32.mrf.mxu1 }
 0x1f4   :  { %v740_v45 = vadd.f32 %v934_v42, %v739_v43 }
 0x1f5   :  { %v1062_v46 = vpop.f32.mrf.mxu1 }
 0x1f6   :  { %v745_v47 = vmax.f32 %v740_v45, 0.0 }
 0x1f7   :  { %v742_v48 = vpop.f32.mrf.mxu1 }
 0x1f8   :  { %v746_v49 = vpack.c.bf16 %v745_v47, %v745_v47 }
 0x1f9   :  { %v1063_v50 = vpop.f32.mrf.mxu1 }
 0x1fa   :  { %1081 = vmatmul.mubr.bf16.vlgmr.msra.gmra.mxu0 %v746_v49 }
 0x2ba   :  { %v850_v52 = vpop.f32.mrf.mxu0 }
 0x2bb   :  { %v851_v44 = vadd.f32 %v943_v51, %v850_v52 }
 0x2bc   :  { %v1082_v53 = vpop.f32.mrf.mxu0 }
 0x2bd   :  { %856 = vmax.xlane.f32.xlu0 %v851_v44 }
 0x2be   :  { %v853_v54 = vpop.f32.mrf.mxu0 }
 0x2c0   :  { %v1083_v55 = vpop.f32.mrf.mxu0 }
 0x346   :  { %v857_v56 = vpop.xlane.xlu0 %856 }
 0x347   :  { %v858_v57 = vsub.f32 %v851_v44, %v857_v56 }
 0x349   :  { %v859_v58 = vmul.f32 1.442695, %v858_v57 }
 0x34b   :  { %1157 = vpow2.f32 %v859_v58 }
 0x358   :  { %v1158_v59 = vpop.eup %1157 }
 0x359   :  { %861 = vadd.xlane.f32.xlu0 %v1158_v59 }
 0x3e2   :  { %v862_v60 = vpop.xlane.xlu0 %861 }
 0x3e3   :  { %1159 = vrcp.f32 %v862_v60 }
 0x3f0   :  { %v1160_v61 = vpop.eup %1159 }
 0x3f1   :  { %v864_v62 = vmul.f32 %v1160_v61, %v1158_v59 }
 0x3f3   :  { %v865_v63 = vpack.c.bf16 %v864_v62, %v864_v62 }
 0x3f5   :  { %866 = vst [vmem:[#allocation8] sm:$0xf] %v865_v63 }
 0x3f6   :  { %1232 = shalt.err (!%p1229_p5)
}
 0x3f7   :  { %876 = dma.vmem_to_hbm [thread:$0]  %s874_s10, 64, %s1328_s4, [#allocation4]  }
 0x3f8   :  { %1245 = dma.done.wait [#allocation4], 64  }
 0x3f9   :  { %1246 = vsyncadd [#allocation4], 4294967232 }
 0x3fa   :  { %880 = vsyncpa [#allocation3], 1 }
 0x3fb   :  { %881 = vsyncpa [#allocation6], 1 }
 0x3fc   :  { %882 = vsyncpa [#allocation4], 1 }

</bundles_post_ra>
